<compile_context>
chip_gen: v6e
topology: v6e:2x2x1
jax: 0.10.0
libtpu: 0.0.40
codegen_flags: <defaults>
</compile_context>

<pallas_src>
import math

import jax
import jax.numpy as jnp
from jax.experimental import pallas as pl
from jax.experimental.pallas import tpu as pltpu


# ----------------------------------------------------------------------------
# Kernels
# ----------------------------------------------------------------------------
def _pe_add_kernel_3d(x_ref, pe_ref, o_ref):
    # x_ref: (tile_s, B, D); pe_ref: (tile_s, 1, D) — broadcast over batch.
    o_ref[...] = x_ref[...] + pe_ref[...]


def _make_pe_add_kernel_flat(batch: int):
    def kernel(x_ref, pe_ref, o_ref):
        # x_ref/o_ref: (tile_s, B*D); pe_ref: (tile_s, D), D % 128 == 0.
        pe = pe_ref[...]
        if batch > 1:
            # Lane-aligned repeat (each copy is a multiple of 128 lanes wide):
            # column b*D + d of x corresponds to pe[:, d].
            pe = jnp.concatenate([pe] * batch, axis=1)
        o_ref[...] = x_ref[...] + pe
    return kernel


# ----------------------------------------------------------------------------
# Table construction (identical to the PyTorch __init__; pre-cast to the
# runtime dtype here so the forward never pays a per-call cast pass).
# ----------------------------------------------------------------------------
def make_positional_encoding_table(d_model: int, max_len: int = 5000,
                                   dtype=jnp.float32) -> jnp.ndarray:
    position = jnp.arange(max_len, dtype=jnp.float32)[:, None]          # (max_len, 1)
    div_term = jnp.exp(
        jnp.arange(0, d_model, 2, dtype=jnp.float32)
        * (-math.log(10000.0) / d_model)
    )                                                                   # (d_model/2,)
    angles = position * div_term                                        # (max_len, d_model/2)
    pe = jnp.zeros((max_len, 1, d_model), dtype=jnp.float32)
    pe = pe.at[:, 0, 0::2].set(jnp.sin(angles))
    pe = pe.at[:, 0, 1::2].set(jnp.cos(angles))
    return pe.astype(dtype)


# ----------------------------------------------------------------------------
# Tile / VMEM planning
# ----------------------------------------------------------------------------
def _round_up(v: int, m: int) -> int:
    return ((v + m - 1) // m) * m


def _sublanes_for_itemsize(itemsize: int) -> int:
    # Packed sublanes per vreg column: 8 for f32, 16 for bf16, 32 for int8/fp8.
    return max(8, 32 // max(int(itemsize), 1))


def _working_set_bytes(tile_s: int, B: int, D: int, itemsize: int,
                       flatten: bool) -> int:
    """Double-buffered VMEM footprint of one grid step (x + out + pe tiles)."""
    sub = _sublanes_for_itemsize(itemsize)
    if flatten:
        rows = _round_up(max(tile_s, 1), sub)
        x_tile = rows * _round_up(B * D, 128) * itemsize
        pe_tile = rows * _round_up(D, 128) * itemsize
    else:
        d_pad = _round_up(D, 128)
        x_tile = tile_s * _round_up(B, sub) * d_pad * itemsize
        pe_tile = tile_s * sub * d_pad * itemsize
    return 2 * (2 * x_tile + pe_tile)          # 2x for double buffering


def _choose_tile_s(S: int, B: int, D: int, itemsize: int, flatten: bool, *,
                   vmem_budget_bytes: int = 24 << 20,
                   tile_cap: int = 1024,
                   min_steps: int = 2) -> int:
    """Largest seq tile within the VMEM budget, balanced to >= min_steps grid
    steps (megacore sharding on multi-TC chips, no near-empty tail)."""
    sub = _sublanes_for_itemsize(itemsize)
    d_pad = _round_up(D, 128)
    if flatten:
        per_row = (2 * _round_up(B * D, 128) + d_pad) * itemsize
    else:
        per_row = (2 * _round_up(B, sub) + sub) * d_pad * itemsize
    per_row *= 2                                        # double buffering
    tile_s = max(sub, vmem_budget_bytes // max(per_row, 1))

    # Balance: at least min_steps grid steps (when S permits), at most tile_cap
    # rows (~measured f32 sweet spot), even splits to avoid a tiny tail step.
    target_steps = max(min_steps, pl.cdiv(S, tile_cap))
    balanced = _round_up(pl.cdiv(S, target_steps), sub)
    tile_s = min(tile_s, tile_cap, balanced, max(S, 1))
    if tile_s > sub:
        tile_s -= tile_s % sub
    return max(1, int(tile_s))


# ----------------------------------------------------------------------------
# Forward
# ----------------------------------------------------------------------------
def positional_encoding_forward(x: jnp.ndarray, pe: jnp.ndarray, *,
                                tile_s: int | None = None,
                                donate_x: bool = False,
                                vmem_limit_bytes: int | None = None,
                                vmem_budget_bytes: int = 24 << 20) -> jnp.ndarray:
    """x: [seq_len, batch, d_model]; pe: [max_len, 1, d_model] (full table)."""
    S, B, D = x.shape
    max_len = pe.shape[0]
    if max_len < S:
        raise ValueError(f"pe table too short: max_len={max_len} < seq_len={S}")
    if pe.dtype != x.dtype:
        # Prefer pre-casting at init (make_positional_encoding_table(dtype=...))
        # so this per-call pass never happens.
        pe = pe.astype(x.dtype)

    itemsize = jnp.dtype(x.dtype).itemsize
    sub = _sublanes_for_itemsize(itemsize)
    # Lane-dense flattened layout when small B would otherwise waste sublanes.
    flatten = (D % 128 == 0) and (B < sub)

    if tile_s is None:
        tile_s = _choose_tile_s(S, B, D, itemsize, flatten,
                                vmem_budget_bytes=vmem_budget_bytes)
    tile_s = max(1, int(tile_s))

    if flatten:
        # pe's block has (tile_s, D) as its trailing dims and tile_s != max_len,
        # so keep tile_s a multiple of the sublane pack (>= 8).
        tile_s = min(tile_s, _round_up(S, sub))
        tile_s = _round_up(tile_s, sub)
    else:
        tile_s = min(tile_s, S)

    grid = (pl.cdiv(S, tile_s),)

    if vmem_limit_bytes is None:
        ws = _working_set_bytes(tile_s, B, D, itemsize, flatten)
        # Working set + 25% headroom; with the default 24 MiB budget this stays
        # well under v7x's 64 MiB physical VMEM (and v5e/v6e's 128 MiB).
        vmem_limit_bytes = max(4 << 20, int(ws * 5 // 4))

    extra = {}
    if donate_x:
        # Saves only the output HBM allocation (no bandwidth win); the caller
        # must also donate x at the jit boundary (donate_argnums) or XLA copies.
        extra["input_output_aliases"] = {0: 0}

    compiler_params = pltpu.CompilerParams(
        dimension_semantics=("parallel",),      # independent seq tiles
        vmem_limit_bytes=int(vmem_limit_bytes),
    )

    if flatten:
        x2 = x.reshape(S, B * D)                # contiguous view: free
        pe2 = pe.reshape(max_len, D)            # full table; grid selects blocks
        out = pl.pallas_call(
            _make_pe_add_kernel_flat(B),
            out_shape=jax.ShapeDtypeStruct((S, B * D), x.dtype),
            grid=grid,
            in_specs=[
                pl.BlockSpec((tile_s, B * D), lambda i: (i, 0)),
                pl.BlockSpec((tile_s, D), lambda i: (i, 0)),
            ],
            out_specs=pl.BlockSpec((tile_s, B * D), lambda i: (i, 0)),
            compiler_params=compiler_params,
            **extra,
        )(x2, pe2)
        return out.reshape(S, B, D)

    return pl.pallas_call(
        _pe_add_kernel_3d,
        out_shape=jax.ShapeDtypeStruct((S, B, D), x.dtype),
        grid=grid,
        in_specs=[
            pl.BlockSpec((tile_s, B, D), lambda i: (i, 0, 0)),
            pl.BlockSpec((tile_s, 1, D), lambda i: (i, 0, 0)),
        ],
        out_specs=pl.BlockSpec((tile_s, B, D), lambda i: (i, 0, 0)),
        compiler_params=compiler_params,
        **extra,
    )(x, pe)
    # eval-mode dropout == identity


if __name__ == "__main__":
    key = jax.random.PRNGKey(0)

    # Case 1: module-convention small shape; D % 128 != 0 -> 3-D fallback path.
    S1, B1, D1 = 8, 2, 32
    x1 = jax.random.normal(key, (S1, B1, D1), dtype=jnp.float32)
    pe1 = make_positional_encoding_table(D1, max_len=64)
    y1 = positional_encoding_forward(x1, pe1)
    jax.block_until_ready(y1)
    ref1 = x1 + pe1[:S1]
    assert y1.shape == (S1, B1, D1)
    assert jnp.allclose(y1, ref1, atol=1e-6), "mismatch vs reference (case 1)"

    # Case 2: lane-dense D with small batch -> flattened [S, B*D] path,
    # multi-step pipelined grid with a ragged tail; full (unsliced) pe table.
    S2, B2, D2 = 100, 2, 128
    x2 = jax.random.normal(jax.random.PRNGKey(1), (S2, B2, D2), dtype=jnp.float32)
    pe2 = make_positional_encoding_table(D2, max_len=512)
    y2 = positional_encoding_forward(x2, pe2, tile_s=32)     # grid = (4,)
    jax.block_until_ready(y2)
    ref2 = x2 + pe2[:S2]
    assert jnp.allclose(y2, ref2, atol=1e-6), "mismatch vs reference (case 2)"

    # Case 3: bf16, batch=1 -> dtype-aware tiling (16 sublanes), auto tile_s /
    # auto vmem limit, balanced 2-step grid.
    S3, B3, D3 = 64, 1, 128
    x3 = jax.random.normal(jax.random.PRNGKey(2), (S3, B3, D3), dtype=jnp.bfloat16)
    pe3 = make_positional_encoding_table(D3, max_len=128, dtype=jnp.bfloat16)
    y3 = positional_encoding_forward(x3, pe3)
    jax.block_until_ready(y3)
    ref3 = x3 + pe3[:S3]
    assert jnp.allclose(y3.astype(jnp.float32), ref3.astype(jnp.float32),
                        atol=1e-2), "mismatch vs reference (case 3)"

    print("KERNEL_OK")
</pallas_src>

<mosaic_0001>
module attributes {stable_mosaic.version = 11 : i64} {
  func.func @_pe_add_kernel_3d(%arg0: i32, %arg1: memref<8x2x32xf32, #tpu.memory_space<vmem>>, %arg2: memref<8x1x32xf32, #tpu.memory_space<vmem>>, %arg3: memref<8x2x32xf32, #tpu.memory_space<vmem>>) attributes {dimension_semantics = [#tpu.dimension_semantics<parallel>], iteration_bounds = array<i64: 1>, scalar_prefetch = 0 : i64, scratch_operands = 0 : i64, tpu.core_type = #tpu.core_type<tc>, window_params = [{transform_indices = @transform_0, window_bounds = array<i64: 8, 2, 32>}, {transform_indices = @transform_1, window_bounds = array<i64: 8, 1, 32>}, {transform_indices = @transform_2, window_bounds = array<i64: 8, 2, 32>}]} {
    %c0 = arith.constant 0 : index
    %c0_0 = arith.constant 0 : index
    %c0_1 = arith.constant 0 : index
    %0 = vector.load %arg1[%c0, %c0_0, %c0_1] : memref<8x2x32xf32, #tpu.memory_space<vmem>>, vector<8x2x32xf32>
    %c0_2 = arith.constant 0 : index
    %c0_3 = arith.constant 0 : index
    %c0_4 = arith.constant 0 : index
    %1 = vector.load %arg2[%c0_2, %c0_3, %c0_4] : memref<8x1x32xf32, #tpu.memory_space<vmem>>, vector<8x1x32xf32>
    %2 = vector.broadcast %1 : vector<8x1x32xf32> to vector<8x2x32xf32>
    %3 = arith.addf %0, %2 : vector<8x2x32xf32>
    %c0_5 = arith.constant 0 : index
    %c0_6 = arith.constant 0 : index
    %c0_7 = arith.constant 0 : index
    %4 = vector.load %arg3[%c0_5, %c0_6, %c0_7] : memref<8x2x32xf32, #tpu.memory_space<vmem>>, vector<8x2x32xf32>
    tpu.vector_store %arg3[%c0_5, %c0_6, %c0_7], %3 {strides = array<i32>} : memref<8x2x32xf32, #tpu.memory_space<vmem>>, vector<8x2x32xf32>,
    return
  }
  func.func @transform_0(%arg0: i32) -> (i32, i32, i32) {
    %c0_i32 = arith.constant 0 : i32
    %c0_i32_0 = arith.constant 0 : i32
    %c0_i32_1 = arith.constant 0 : i32
    return %arg0, %c0_i32, %c0_i32_0 : i32, i32, i32
  }
  func.func @transform_1(%arg0: i32) -> (i32, i32, i32) {
    %c0_i32 = arith.constant 0 : i32
    %c0_i32_0 = arith.constant 0 : i32
    %c0_i32_1 = arith.constant 0 : i32
    return %arg0, %c0_i32, %c0_i32_0 : i32, i32, i32
  }
  func.func @transform_2(%arg0: i32) -> (i32, i32, i32) {
    %c0_i32 = arith.constant 0 : i32
    %c0_i32_0 = arith.constant 0 : i32
    %c0_i32_1 = arith.constant 0 : i32
    return %arg0, %c0_i32, %c0_i32_0 : i32, i32, i32
  }
}

</mosaic_0001>

<bundles_post_ra>
// kernel: tpu_custom_call.1
= control target key start
LH: loop header
LB: loop body
LE: loop exit
PB: predicated region body
PF: predicated region fallthrough
CT: control target
= control target key end

     0   :  { %vm84_vm0 = vcmask 254976   ;;  %s219_s0 = inlined_call_operand.vmem [shape: f32[8,2,32], index: 0, kind: input, shape index: {}]   ;;  %s220_s1 = inlined_call_operand.vmem [shape: f32[64,1,32], index: 1, kind: input, shape index: {}]   ;;  %s221_s2 = inlined_call_operand.hbm [shape: f32[8,2,32], index: 2, kind: output, shape index: {}]  }
   0x1   :  { %v12_v0 = vld [vmem:[%s219_s0] sm:$0x3]  ;;  %v13_v3 = vld [vmem:[%s219_s0 + $0x2] sm:$0x3]  ;;  %v14_v5 = vld [vmem:[%s219_s0 + $0x4] sm:$0x3] }
   0x2   :  { %v109_v1 = vld [vmem:[%s220_s1] ss:$0 sm:$0xff]  ;;  %v110_v4 = vld [vmem:[%s220_s1 + $0x1] ss:$0 sm:$0xff]  ;;  %v111_v7 = vld [vmem:[%s220_s1 + $0x2] ss:$0 sm:$0xff] }
   0x3   :  { %v76_v2 = vadd.f32 %v109_v1, %v12_v0  ;;  %v77_v6 = vadd.f32 %v110_v4, %v13_v3  ;;  %v15_v8 = vld [vmem:[%s219_s0 + $0x6] sm:$0x3]  ;;  %v112_v9 = vld [vmem:[%s220_s1 + $0x3] ss:$0 sm:$0xff]  ;;  %v78_v10 = vadd.f32 %v111_v7, %v14_v5  ;;  %v16_v12 = vld [vmem:[%s219_s0 + $0x8] sm:$0x3] }
   0x4   :  { %v79_v11 = vadd.f32 %v112_v9, %v15_v8  ;;  %v113_v13 = vld [vmem:[%s220_s1 + $0x4] ss:$0 sm:$0xff]  ;;  %v17_v14 = vld [vmem:[%s219_s0 + $0xa] sm:$0x3]  ;;  %v114_v16 = vld [vmem:[%s220_s1 + $0x5] ss:$0 sm:$0xff] }
   0x5   :  { %85 = vst.msk [vmem:[#allocation2] sm:$0x3] %vm84_vm0, %v76_v2  ;;  %86 = vst.msk [vmem:[#allocation2 + $0x2] sm:$0x3] %vm84_vm0, %v77_v6  ;;  %v80_v15 = vadd.f32 %v113_v13, %v16_v12  ;;  %v18_v17 = vld [vmem:[%s219_s0 + $0xc] sm:$0x3]  ;;  %v81_v19 = vadd.f32 %v114_v16, %v17_v14 }
   0x6   :  { %v115_v18 = vld [vmem:[%s220_s1 + $0x6] ss:$0 sm:$0xff]  ;;  %87 = vst.msk [vmem:[#allocation2 + $0x4] sm:$0x3] %vm84_vm0, %v78_v10  ;;  %88 = vst.msk [vmem:[#allocation2 + $0x6] sm:$0x3] %vm84_vm0, %v79_v11 }
   0x7   :  { %v82_v20 = vadd.f32 %v115_v18, %v18_v17  ;;  %v19_v21 = vld [vmem:[%s219_s0 + $0xe] sm:$0x3]  ;;  %v116_v22 = vld [vmem:[%s220_s1 + $0x7] ss:$0 sm:$0xff] }
   0x8   :  { %7 = vsyncpa [#allocation3], 0  ;;  %89 = vst.msk [vmem:[#allocation2 + $0x8] sm:$0x3] %vm84_vm0, %v80_v15  ;;  %v83_v23 = vadd.f32 %v116_v22, %v19_v21  ;;  %s142_s13 = smov [#allocation2]  }
   0x9   :  { %s98_s14 = sshll.u32 %s142_s13, 4  ;;  %90 = vst.msk [vmem:[#allocation2 + $0xa] sm:$0x3] %vm84_vm0, %v81_v19  ;;  %91 = vst.msk [vmem:[#allocation2 + $0xc] sm:$0x3] %vm84_vm0, %v82_v20  ;;  %s99_s14 = int_to_ptr.vmem [resolvable:$true] %s98_s14 }
   0xa   :  { %92 = vst.msk [vmem:[#allocation2 + $0xe] sm:$0x3] %vm84_vm0, %v83_v23  ;;  %s120_s15 = scalar_lea.vmem %s99_s14, 256  ;;  %p125_p1 = scmp.lt.s32.totalorder %s99_s14, %s99_s14 }
   0xb   :  { %p121_p0 = scmp.ne.s32.totalorder %s99_s14, %s120_s15  ;;  %p126_p2 = scmp.lt.s32.totalorder %s120_s15, %s120_s15 }
   0xd   :  { %p127_p3 = por %p126_p2, %p125_p1 }
   0xf   :  { %p128_p4 = pnand %p127_p3, %p121_p0 }
  0x11   :  { %131 = shalt.err (!%p128_p4)
}
  0x12   :  { %s143_s0 = smov 32   ;;  %s144_s1 = smov 2  }
  0x13   :  { %104 = dma.vmem_to_hbm [thread:$0]  %s99_s14, 256, %s221_s2, [#allocation3], %s143_s0, %s143_s0, %s144_s1  }
  0x14   :  { %140 = dma.done.wait [#allocation3], 256  }
  0x15   :  { %141 = vsyncadd [#allocation3], 4294967040 }
  0x16   :  { %108 = vsyncpa [#allocation3], 1 }

</bundles_post_ra>
